<compile_context>
chip_gen: v7x
topology: tpu7x:2x2x1
jax: 0.10.0
libtpu: 0.0.40
codegen_flags: <defaults>
</compile_context>

<pallas_src>
import jax
import jax.numpy as jnp
from jax.experimental import pallas as pl
from jax.experimental.pallas import tpu as pltpu


def mlp_kernel(xT_ref, w1_ref, b1_ref, w2_ref, b2_ref, w3_ref, b3_ref, o_ref):
    # Feature-major: batch on lanes.  xT: (19, TB) bf16.
    xT = xT_ref[...]
    # Layer 1: (64, 19) @ (19, TB) -> (64, TB), f32 accumulate; bias/ReLU in f32.
    h1 = jnp.dot(w1_ref[...], xT, preferred_element_type=jnp.float32)
    h1 = jnp.maximum(h1 + b1_ref[...], 0.0)
    # Layer 2: (32, 64) @ (64, TB) -> (32, TB)
    h2 = jnp.dot(w2_ref[...], h1.astype(w2_ref.dtype),
                 preferred_element_type=jnp.float32)
    h2 = jnp.maximum(h2 + b2_ref[...], 0.0)
    # Layer 3: (1, 32) @ (32, TB) -> (1, TB)   (lane-dense output row)
    out = jnp.dot(w3_ref[...], h2.astype(w3_ref.dtype),
                  preferred_element_type=jnp.float32) + b3_ref[...]
    o_ref[...] = out.astype(o_ref.dtype)


def ann_model_forward(x, params, *, tb=2048):
    """x: (B, 19) float32.  params: PyTorch-layout weights (out, in), biases (out, 1)."""
    B, D = x.shape
    w1, b1 = params["w1"], params["b1"]   # (64, 19), (64, 1)
    w2, b2 = params["w2"], params["b2"]   # (32, 64), (32, 1)
    w3, b3 = params["w3"], params["b3"]   # (1, 32),  (1, 1)

    # Pad batch to a lane-aligned multiple of the tile size.
    Bp = max(pl.cdiv(B, 128) * 128, 128)
    TB = min(tb, Bp)
    Bp = pl.cdiv(Bp, TB) * TB
    num_tiles = Bp // TB

    # bf16 activations / weights, f32 biases (bias-add + ReLU stay in f32).
    x_pad = jnp.pad(x, ((0, Bp - B), (0, 0)))
    xT = x_pad.T.astype(jnp.bfloat16)              # (19, Bp), lane-dense in batch
    w1b = w1.astype(jnp.bfloat16)
    w2b = w2.astype(jnp.bfloat16)
    w3b = w3.astype(jnp.bfloat16)

    grid_spec = pl.GridSpec(
        grid=(num_tiles,),
        in_specs=[
            pl.BlockSpec((D, TB), lambda i: (0, i)),        # x tile (pipelined)
            pl.BlockSpec(w1b.shape, lambda i: (0, 0)),      # weights: VMEM-resident
            pl.BlockSpec(b1.shape, lambda i: (0, 0)),
            pl.BlockSpec(w2b.shape, lambda i: (0, 0)),
            pl.BlockSpec(b2.shape, lambda i: (0, 0)),
            pl.BlockSpec(w3b.shape, lambda i: (0, 0)),
            pl.BlockSpec(b3.shape, lambda i: (0, 0)),
        ],
        out_specs=pl.BlockSpec((1, TB), lambda i: (0, i)),  # lane-dense output slab
    )

    flops = 2 * Bp * (D * 64 + 64 * 32 + 32 * 1)
    bytes_accessed = (Bp * D * 2 + Bp * 4
                      + (w1b.size + w2b.size + w3b.size) * 2
                      + (b1.size + b2.size + b3.size) * 4)

    outT = pl.pallas_call(
        mlp_kernel,
        out_shape=jax.ShapeDtypeStruct((1, Bp), jnp.float32),
        grid_spec=grid_spec,
        compiler_params=pltpu.CompilerParams(
            dimension_semantics=("parallel",)),
        cost_estimate=pl.CostEstimate(
            flops=flops, transcendentals=0, bytes_accessed=bytes_accessed),
    )(xT, w1b, b1, w2b, b2, w3b, b3)

    return outT[0, :B].reshape(B, 1)


def init_params(key, input_dim=19):
    """Deterministic synthetic init matching the PyTorch module's shapes.

    Weights kept in PyTorch's (out_features, in_features) layout; biases as
    (out_features, 1) columns for lane-broadcast in the feature-major kernel.
    # TODO(synk): PyTorch's default init is kaiming-uniform; import real weights for parity.
    """
    k1, k2, k3, k4, k5, k6 = jax.random.split(key, 6)
    scale = 0.1
    return {
        "w1": scale * jax.random.normal(k1, (64, input_dim), jnp.float32),
        "b1": scale * jax.random.normal(k2, (64, 1), jnp.float32),
        "w2": scale * jax.random.normal(k3, (32, 64), jnp.float32),
        "b2": scale * jax.random.normal(k4, (32, 1), jnp.float32),
        "w3": scale * jax.random.normal(k5, (1, 32), jnp.float32),
        "b3": scale * jax.random.normal(k6, (1, 1), jnp.float32),
    }


def reference_forward(x, p):
    h1 = jnp.maximum(x @ p["w1"].T + p["b1"].T, 0.0)
    h2 = jnp.maximum(h1 @ p["w2"].T + p["b2"].T, 0.0)
    return h2 @ p["w3"].T + p["b3"].T


if __name__ == "__main__":
    input_dim = 19

    key = jax.random.PRNGKey(0)
    kx, kx2, kp = jax.random.split(key, 3)
    params = init_params(kp, input_dim)

    # Small batch (single tile, padded to 128 lanes).
    x = jax.random.normal(kx, (8, input_dim), jnp.float32)
    out = jax.block_until_ready(ann_model_forward(x, params))
    ref = reference_forward(x, params)
    assert out.shape == (8, 1), out.shape
    assert jnp.allclose(out, ref, atol=2e-2, rtol=2e-2), "mismatch vs reference (small batch)"

    # Non-multiple-of-tile batch, multiple grid tiles (exercises padding + pipelining).
    x2 = jax.random.normal(kx2, (300, input_dim), jnp.float32)
    out2 = jax.block_until_ready(ann_model_forward(x2, params, tb=128))
    ref2 = reference_forward(x2, params)
    assert out2.shape == (300, 1), out2.shape
    assert jnp.allclose(out2, ref2, atol=2e-2, rtol=2e-2), "mismatch vs reference (tiled batch)"

    print("KERNEL_OK")
</pallas_src>

<mosaic_0001>
module attributes {stable_mosaic.version = 11 : i64} {
  func.func @mlp_kernel(%arg0: i32, %arg1: memref<19x128xbf16, #tpu.memory_space<vmem>>, %arg2: memref<64x19xbf16, #tpu.memory_space<vmem>>, %arg3: memref<64x1xf32, #tpu.memory_space<vmem>>, %arg4: memref<32x64xbf16, #tpu.memory_space<vmem>>, %arg5: memref<32x1xf32, #tpu.memory_space<vmem>>, %arg6: memref<1x32xbf16, #tpu.memory_space<vmem>>, %arg7: memref<1x1xf32, #tpu.memory_space<vmem>>, %arg8: memref<1x128xf32, #tpu.memory_space<vmem>>) attributes {dimension_semantics = [#tpu.dimension_semantics<parallel>], iteration_bounds = array<i64: 1>, scalar_prefetch = 0 : i64, scratch_operands = 0 : i64, tpu.core_type = #tpu.core_type<tc>, window_params = [{transform_indices = @transform_0, window_bounds = array<i64: 19, 128>}, {pipeline_mode = #tpu.pipeline_mode<synchronous>, transform_indices = @transform_1, window_bounds = array<i64: 64, 19>}, {pipeline_mode = #tpu.pipeline_mode<synchronous>, transform_indices = @transform_2, window_bounds = array<i64: 64, 1>}, {pipeline_mode = #tpu.pipeline_mode<synchronous>, transform_indices = @transform_3, window_bounds = array<i64: 32, 64>}, {pipeline_mode = #tpu.pipeline_mode<synchronous>, transform_indices = @transform_4, window_bounds = array<i64: 32, 1>}, {pipeline_mode = #tpu.pipeline_mode<synchronous>, transform_indices = @transform_5, window_bounds = array<i64: 1, 32>}, {pipeline_mode = #tpu.pipeline_mode<synchronous>, transform_indices = @transform_6, window_bounds = array<i64: 1, 1>}, {transform_indices = @transform_7, window_bounds = array<i64: 1, 128>}]} {
    %c0 = arith.constant 0 : index
    %c0_0 = arith.constant 0 : index
    %0 = vector.load %arg1[%c0, %c0_0] : memref<19x128xbf16, #tpu.memory_space<vmem>>, vector<19x128xbf16>
    %c0_1 = arith.constant 0 : index
    %c0_2 = arith.constant 0 : index
    %1 = vector.load %arg2[%c0_1, %c0_2] : memref<64x19xbf16, #tpu.memory_space<vmem>>, vector<64x19xbf16>
    %cst = arith.constant dense<0.000000e+00> : vector<64x128xf32>
    %2 = tpu.matmul %1, %0, %cst {dimension_numbers = #tpu.dot_dimension_numbers<[1], [0], [0], [1], [0, 0, 1, 1], [], []>} : vector<64x19xbf16>, vector<19x128xbf16>, vector<64x128xf32> -> vector<64x128xf32>
    %c0_3 = arith.constant 0 : index
    %c0_4 = arith.constant 0 : index
    %3 = vector.load %arg3[%c0_3, %c0_4] : memref<64x1xf32, #tpu.memory_space<vmem>>, vector<64x1xf32>
    %4 = vector.broadcast %3 : vector<64x1xf32> to vector<64x128xf32>
    %5 = arith.addf %2, %4 : vector<64x128xf32>
    %cst_5 = arith.constant 0.000000e+00 : f32
    %6 = vector.broadcast %cst_5 : f32 to vector<64x128xf32>
    %7 = arith.maximumf %5, %6 : vector<64x128xf32>
    %c0_6 = arith.constant 0 : index
    %c0_7 = arith.constant 0 : index
    %8 = vector.load %arg4[%c0_6, %c0_7] : memref<32x64xbf16, #tpu.memory_space<vmem>>, vector<32x64xbf16>
    %9 = arith.truncf %7 : vector<64x128xf32> to vector<64x128xbf16>
    %cst_8 = arith.constant dense<0.000000e+00> : vector<32x128xf32>
    %10 = tpu.matmul %8, %9, %cst_8 {dimension_numbers = #tpu.dot_dimension_numbers<[1], [0], [0], [1], [0, 0, 1, 1], [], []>} : vector<32x64xbf16>, vector<64x128xbf16>, vector<32x128xf32> -> vector<32x128xf32>
    %c0_9 = arith.constant 0 : index
    %c0_10 = arith.constant 0 : index
    %11 = vector.load %arg5[%c0_9, %c0_10] : memref<32x1xf32, #tpu.memory_space<vmem>>, vector<32x1xf32>
    %12 = vector.broadcast %11 : vector<32x1xf32> to vector<32x128xf32>
    %13 = arith.addf %10, %12 : vector<32x128xf32>
    %cst_11 = arith.constant 0.000000e+00 : f32
    %14 = vector.broadcast %cst_11 : f32 to vector<32x128xf32>
    %15 = arith.maximumf %13, %14 : vector<32x128xf32>
    %c0_12 = arith.constant 0 : index
    %c0_13 = arith.constant 0 : index
    %16 = vector.load %arg6[%c0_12, %c0_13] : memref<1x32xbf16, #tpu.memory_space<vmem>>, vector<1x32xbf16>
    %17 = arith.truncf %15 : vector<32x128xf32> to vector<32x128xbf16>
    %cst_14 = arith.constant dense<0.000000e+00> : vector<1x128xf32>
    %18 = tpu.matmul %16, %17, %cst_14 {dimension_numbers = #tpu.dot_dimension_numbers<[1], [0], [0], [1], [0, 0, 1, 1], [], []>} : vector<1x32xbf16>, vector<32x128xbf16>, vector<1x128xf32> -> vector<1x128xf32>
    %c0_15 = arith.constant 0 : index
    %c0_16 = arith.constant 0 : index
    %19 = vector.load %arg7[%c0_15, %c0_16] : memref<1x1xf32, #tpu.memory_space<vmem>>, vector<1x1xf32>
    %20 = vector.broadcast %19 : vector<1x1xf32> to vector<1x128xf32>
    %21 = arith.addf %18, %20 : vector<1x128xf32>
    %c0_17 = arith.constant 0 : index
    %c0_18 = arith.constant 0 : index
    %22 = vector.load %arg8[%c0_17, %c0_18] : memref<1x128xf32, #tpu.memory_space<vmem>>, vector<1x128xf32>
    tpu.vector_store %arg8[%c0_17, %c0_18], %21 {strides = array<i32>} : memref<1x128xf32, #tpu.memory_space<vmem>>, vector<1x128xf32>,
    return
  }
  func.func @transform_0(%arg0: i32) -> (i32, i32) {
    %c0_i32 = arith.constant 0 : i32
    %c0_i32_0 = arith.constant 0 : i32
    return %c0_i32, %arg0 : i32, i32
  }
  func.func @transform_1(%arg0: i32) -> (i32, i32) {
    %c0_i32 = arith.constant 0 : i32
    %c0_i32_0 = arith.constant 0 : i32
    %c0_i32_1 = arith.constant 0 : i32
    return %c0_i32, %c0_i32_0 : i32, i32
  }
  func.func @transform_2(%arg0: i32) -> (i32, i32) {
    %c0_i32 = arith.constant 0 : i32
    %c0_i32_0 = arith.constant 0 : i32
    %c0_i32_1 = arith.constant 0 : i32
    return %c0_i32, %c0_i32_0 : i32, i32
  }
  func.func @transform_3(%arg0: i32) -> (i32, i32) {
    %c0_i32 = arith.constant 0 : i32
    %c0_i32_0 = arith.constant 0 : i32
    %c0_i32_1 = arith.constant 0 : i32
    return %c0_i32, %c0_i32_0 : i32, i32
  }
  func.func @transform_4(%arg0: i32) -> (i32, i32) {
    %c0_i32 = arith.constant 0 : i32
    %c0_i32_0 = arith.constant 0 : i32
    %c0_i32_1 = arith.constant 0 : i32
    return %c0_i32, %c0_i32_0 : i32, i32
  }
  func.func @transform_5(%arg0: i32) -> (i32, i32) {
    %c0_i32 = arith.constant 0 : i32
    %c0_i32_0 = arith.constant 0 : i32
    %c0_i32_1 = arith.constant 0 : i32
    return %c0_i32, %c0_i32_0 : i32, i32
  }
  func.func @transform_6(%arg0: i32) -> (i32, i32) {
    %c0_i32 = arith.constant 0 : i32
    %c0_i32_0 = arith.constant 0 : i32
    %c0_i32_1 = arith.constant 0 : i32
    return %c0_i32, %c0_i32_0 : i32, i32
  }
  func.func @transform_7(%arg0: i32) -> (i32, i32) {
    %c0_i32 = arith.constant 0 : i32
    %c0_i32_0 = arith.constant 0 : i32
    return %c0_i32, %arg0 : i32, i32
  }
}

</mosaic_0001>

<bundles_post_ra>
// kernel: tpu_custom_call.1
= control target key start
LH: loop header
LB: loop body
LE: loop exit
PB: predicated region body
PF: predicated region fallthrough
CT: control target
= control target key end

     0   :  { %s615_s0 = inlined_call_operand.vmem [shape: bf16[19,128], index: 0, kind: input, shape index: {}]   ;;  %s616_s1 = inlined_call_operand.vmem [shape: bf16[64,19], index: 1, kind: input, shape index: {}]   ;;  %s617_s2 = inlined_call_operand.vmem [shape: f32[64,1], index: 2, kind: input, shape index: {}]   ;;  %s618_s3 = inlined_call_operand.vmem [shape: bf16[32,64], index: 3, kind: input, shape index: {}]   ;;  %s619_s4 = inlined_call_operand.vmem [shape: f32[32,1], index: 4, kind: input, shape index: {}]   ;;  %s620_s5 = inlined_call_operand.vmem [shape: bf16[1,32], index: 5, kind: input, shape index: {}]   ;;  %s621_s6 = inlined_call_operand.<no memory space> [shape: f32[1,1], index: 6, kind: input, shape index: {}]   ;;  %s622_s7 = inlined_call_operand.hbm [shape: f32[1,128], index: 7, kind: output, shape index: {}]  }
   0x1   :  { %v12_v0 = vstv %s621_s6 }
   0x2   :  { %13 = vst [vmem:[#allocation2] sm:$0x1] %v12_v0 }
   0x3   :  { %v454_v1 = vld [vmem:[%s615_s0] sm:$0xff]   ;;  %vm131_vm0 = vcmask 1040384   ;;  %v455_v2 = vld [vmem:[%s615_s0 + $0x8] ss:$0 sps:$4 sm:$0x33]   ;;  %vm132_vm1 = vcmask 1041408  }
   0x4   :  { %415 = vmatprep.subr.bf16.mxu0 %v454_v1  ;;  %v456_v3 = vld [vmem:[%s616_s1] sm:$0xff]   ;;  %v486_v4 = vmov 65535   ;;  %vm118_vm2 = vcmask 154624   ;;  %v487_v8 = vmov 0   ;;  %v457_v10 = vld [vmem:[%s616_s1 + $0x8] sm:$0xff]   ;;  %v43_v11 = vld [vmem:[%s617_s2 + $0x10] sm:$0xff] }
   0x5   :  { %416 = vmatpush3.bf16.msra.mxu0 %v454_v1  ;;  %v133_v5 = vsel %vm131_vm0, 4294967295, %v486_v4  ;;  %419 = vmatprep.mubr.msk.bf16.mxu0 %vm118_vm2, %v456_v3  ;;  %v41_v9 = vld [vmem:[%s617_s2] sm:$0xff]  ;;  %v458_v12 = vld [vmem:[%s616_s1 + $0x10] sm:$0xff]   ;;  %v42_v13 = vld [vmem:[%s617_s2 + $0x8] sm:$0xff] }
   0x6   :  { %v134_v6 = vsel %vm132_vm1, %v133_v5, 0  ;;  %452 = vset.pattern.permute.xlu0 %v487_v8  ;;  %453 = vset.pattern.permute.xlu1 %v487_v8  ;;  %v44_v14 = vld [vmem:[%s617_s2 + $0x18] sm:$0xff]  ;;  %v45_v15 = vld [vmem:[%s617_s2 + $0x20] sm:$0xff] }
   0x7   :  { %v136_v7 = vand.u32 %v455_v2, %v134_v6  ;;  %51 = vperm.xlu0 %452, %v41_v9   ;;  %61 = vperm.xlu1 %453, %v43_v11  }
   0x9   :  { %417 = vmatprep.subr.bf16.mxu0 %v136_v7 }
   0xa   :  { %418 = vmatpush3.bf16.msra.mxu0 %v136_v7 }
   0xb   :  { %56 = vperm.xlu0 %452, %v42_v13   ;;  %66 = vperm.xlu1 %453, %v44_v14  }
   0xd   :  { %420 = vmatmul.mubr.msk.bf16.vlgmr.msra.gmra.mrb[0].mxu0 %vm118_vm2, %v457_v10 }
   0xe   :  { %423 = vmatprep.mubr.msk.bf16.mxu0 %vm118_vm2, %v458_v12 }
   0xf   :  { %14 = vsyncpa [#allocation4], 0  ;;  %v46_v16 = vld [vmem:[%s617_s2 + $0x28] sm:$0xff]  ;;  %v459_v17 = vld [vmem:[%s616_s1 + $0x18] sm:$0xff]   ;;  %71 = vperm.xlu0 %452, %v45_v15   ;;  %vm253_vm3 = vcmask 523264   ;;  %v488_v63 = vmov 0.0  }
  0x10   :  { %v47_v18 = vld [vmem:[%s617_s2 + $0x30] sm:$0xff]  ;;  %76 = vperm.xlu1 %453, %v46_v16   ;;  %v48_v19 = vld [vmem:[%s617_s2 + $0x38] sm:$0xff]  ;;  %v219_v20 = vld [vmem:[%s619_s4] sm:$0xff]  ;;  %439 = vmatprep.subr.bf16.mxu0 %v488_v63  ;;  %vm489_vm4 = vmmov 0   ;;  %vm326_vm5 = vcmask 261120   ;;  %s490_s14 = smov [#allocation3]  }
  0x11   :  { %v220_v21 = vld [vmem:[%s619_s4 + $0x8] sm:$0xff]  ;;  %v221_v22 = vld [vmem:[%s619_s4 + $0x10] sm:$0xff]  ;;  %v222_v23 = vld [vmem:[%s619_s4 + $0x18] sm:$0xff]  ;;  %s377_s15 = sshll.u32 %s490_s14, 4  ;;  %s378_s15 = int_to_ptr.vmem [resolvable:$true] %s377_s15 }
  0x12   :  { %v316_v24 = vld [vmem:[#allocation2] sm:$0x1]  ;;  %v461_v62 = vld [vmem:[%s618_s3 + $0x8] sm:$0xff]   ;;  %s462_s16 = scalar_lea.vmem %s378_s15, 16  ;;  %s466_s17 = scalar_lea.vmem %s378_s15, 32 }
  0x13   :  { %81 = vperm.xlu0 %452, %v47_v18   ;;  %v460_v25 = vld [vmem:[%s618_s3] sm:$0xff]   ;;  %p463_p0 = scmp.ne.s32.totalorder %s378_s15, %s462_s16  ;;  %p467_p1 = scmp.lt.s32.totalorder %s378_s15, %s378_s15 }
  0x14   :  { %86 = vperm.xlu1 %453, %v48_v19   ;;  %435 = vmatprep.mubr.msk.bf16.mxu1 %vm253_vm3, %v460_v25  ;;  %v313_v18 = vld [vmem:[%s620_s5] sm:$0x1]  ;;  %v322_v19 = vlaneseq  ;;  %p468_p2 = scmp.lt.s32.totalorder %s466_s17, %s462_s16 }
  0x15   :  { %424 = vmatmul.mubr.msk.bf16.gmra.mrb[4].mxu0 %vm118_vm2, %v459_v17 }
  0x16   :  { %443 = vmatprep.mubr.msk.bf16.mxu0 %vm489_vm4, %v488_v63  ;;  %p469_p3 = por %p468_p2, %p467_p1 }
  0x17   :  { %225 = vperm.xlu0 %452, %v219_v20   ;;  %v323_v20 = vshrl.u32 %v322_v19, 7 }
  0x18   :  { %230 = vperm.xlu1 %453, %v220_v21   ;;  %p470_p4 = pnand %p469_p3, %p463_p0 }
  0x19   :  { %v324_v21 = vsub.s32 0, %v323_v20 }
  0x1b   :  { %235 = vperm.xlu0 %452, %v221_v22  }
  0x1c   :  { %240 = vperm.xlu1 %453, %v222_v23  }
  0x1f   :  { %319 = vperm.xlu0 %452, %v316_v24  }
  0x86   :  { %v52_v26 = vpop.permute.xlu0 %51  ;;  %v62_v27 = vpop.permute.xlu1 %61 }
  0x8a   :  { %v57_v28 = vpop.permute.xlu0 %56  ;;  %v67_v29 = vpop.permute.xlu1 %66 }
  0x8e   :  { %v72_v33 = vpop.permute.xlu0 %71 }
  0x8f   :  { %v77_v38 = vpop.permute.xlu1 %76 }
  0x92   :  { %v82_v45 = vpop.permute.xlu0 %81 }
  0x93   :  { %v87_v50 = vpop.permute.xlu1 %86 }
  0x96   :  { %v226_v0 = vpop.permute.xlu0 %225 }
  0x97   :  { %v231_v1 = vpop.permute.xlu1 %230 }
  0x9a   :  { %v236_v2 = vpop.permute.xlu0 %235 }
  0x9b   :  { %v241_v6 = vpop.permute.xlu1 %240 }
  0x9e   :  { %v320_v22 = vpop.permute.xlu0 %319 }
  0x9f   :  { %v325_v23 = vrot.slane %v320_v22, %v324_v21 }
  0xe0   :  { %v421_v30 = vpop.f32.mrb[0].mxu0 }
  0xe1   :  { %v181_v31 = vadd.f32 %v421_v30, %v62_v27  ;;  %v172_v32 = vpop.f32.mrb[1].mxu0 }
  0xe2   :  { %v173_v34 = vadd.f32 %v172_v32, %v52_v26  ;;  %v422_v35 = vpop.f32.mrb[2].mxu0 }
  0xe3   :  { %v184_v36 = vadd.f32 %v422_v35, %v67_v29  ;;  %v175_v37 = vpop.f32.mrb[3].mxu0  ;;  %v205_v40 = vmax.f32 %v181_v31, 0.0 }
  0xe4   :  { %v176_v39 = vadd.f32 %v175_v37, %v57_v28  ;;  %v203_v42 = vmax.f32 %v173_v34, 0.0 }
  0xe5   :  { %v206_v41 = vmax.f32 %v184_v36, 0.0 }
  0xe6   :  { %v204_v43 = vmax.f32 %v176_v39, 0.0 }
  0xe7   :  { %v216_v44 = vpack.c.bf16 %v206_v41, %v205_v40 }
  0xe8   :  { %v425_v46 = vpop.f32.mrb[4].mxu0  ;;  %v215_v47 = vpack.c.bf16 %v204_v43, %v203_v42 }
  0xe9   :  { %v197_v48 = vadd.f32 %v425_v46, %v82_v45  ;;  %v188_v49 = vpop.f32.mrb[5].mxu0 }
  0xea   :  { %v189_v51 = vadd.f32 %v188_v49, %v72_v33  ;;  %v426_v52 = vpop.f32.mrb[6].mxu0  ;;  %427 = vmatprep.subr.bf16.mxu1 %v215_v47 }
  0xeb   :  { %v200_v53 = vadd.f32 %v426_v52, %v87_v50  ;;  %v191_v54 = vpop.f32.mrb[7].mxu0  ;;  %428 = vmatpush3.bf16.msra.mxu1 %v215_v47  ;;  %v209_v56 = vmax.f32 %v197_v48, 0.0 }
  0xec   :  { %v192_v55 = vadd.f32 %v191_v54, %v77_v38  ;;  %429 = vmatprep.subr.bf16.mxu1 %v216_v44  ;;  %v207_v58 = vmax.f32 %v189_v51, 0.0 }
  0xed   :  { %v210_v57 = vmax.f32 %v200_v53, 0.0 }
  0xee   :  { %v208_v59 = vmax.f32 %v192_v55, 0.0 }
  0xef   :  { %v218_v60 = vpack.c.bf16 %v210_v57, %v209_v56  ;;  %430 = vmatpush3.bf16.msra.mxu1 %v216_v44 }
  0xf0   :  { %v217_v61 = vpack.c.bf16 %v208_v59, %v207_v58 }
  0xf2   :  { %431 = vmatprep.subr.bf16.mxu1 %v217_v61 }
  0xf3   :  { %432 = vmatpush3.bf16.msra.mxu1 %v217_v61 }
  0xf4   :  { %433 = vmatprep.subr.bf16.mxu1 %v218_v60 }
  0xf7   :  { %434 = vmatpush3.bf16.msra.mxu1 %v218_v60 }
  0xfa   :  { %436 = vmatmul.mubr.msk.bf16.vlgmr.msra.gmra.mrb[0].mxu1 %vm253_vm3, %v461_v62 }
 0x1cd   :  { %v437_v3 = vpop.f32.mrb[0].mxu1 }
 0x1ce   :  { %v303_v4 = vadd.f32 %v437_v3, %v236_v2  ;;  %v294_v5 = vpop.f32.mrb[1].mxu1 }
 0x1cf   :  { %v295_v7 = vadd.f32 %v294_v5, %v226_v0  ;;  %v438_v8 = vpop.f32.mrb[2].mxu1 }
 0x1d0   :  { %v306_v9 = vadd.f32 %v438_v8, %v241_v6  ;;  %v297_v10 = vpop.f32.mrb[3].mxu1  ;;  %v311_v12 = vmax.f32 %v303_v4, 0.0 }
 0x1d1   :  { %v298_v11 = vadd.f32 %v297_v10, %v231_v1  ;;  %v309_v14 = vmax.f32 %v295_v7, 0.0 }
 0x1d2   :  { %v312_v13 = vmax.f32 %v306_v9, 0.0 }
 0x1d3   :  { %v310_v15 = vmax.f32 %v298_v11, 0.0 }
 0x1d4   :  { %v315_v16 = vpack.c.bf16 %v312_v13, %v311_v12 }
 0x1d5   :  { %v314_v17 = vpack.c.bf16 %v310_v15, %v309_v14 }
 0x1d7   :  { %440 = vmatpush3.bf16.msra.mxu0 %v314_v17 }
 0x1d8   :  { %441 = vmatprep.subr.bf16.mxu0 %v488_v63 }
 0x1db   :  { %442 = vmatpush3.bf16.msra.mxu0 %v315_v16 }
 0x1de   :  { %444 = vmatmul.mubr.msk.bf16.vlgmr.msra.gmra.mrb[8].mxu0 %vm326_vm5, %v313_v18 }
 0x2b1   :  { %v364_v24 = vpop.f32.mrb[8].mxu0 }
 0x2b2   :  { %v365_v25 = vadd.f32 %v364_v24, %v325_v23  ;;  %v445_v26 = vpop.f32.mrb[9].mxu0 }
 0x2b3   :  { %v367_v27 = vpop.f32.mrb[10].mxu0 }
 0x2b4   :  { %370 = vst [vmem:[#allocation3] sm:$0x1] %v365_v25  ;;  %v446_v28 = vpop.f32.mrb[11].mxu0 }
 0x2b5   :  { %473 = shalt.err (!%p470_p4)
}
 0x2b6   :  { %s474_s19 = scalar_lea.hbm %s622_s7, 16 }
 0x2b7   :  { %p475_p5 = scmp.ne.s32.totalorder %s622_s7, %s474_s19  ;;  %p478_p6 = scmp.lt.u32.totalorder %s474_s19, %s622_s7 }
 0x2b9   :  { %p480_p7 = pnand %p478_p6, %p475_p5 }
 0x2bb   :  { %483 = shalt.err (!%p480_p7)
}
 0x2bc   :  { %380 = dma.vmem_to_hbm [thread:$0]  %s378_s15, 16, %s622_s7, [#allocation4]  }
 0x2bd   :  { %484 = dma.done.wait [#allocation4], 16  }
 0x2be   :  { %485 = vsyncadd [#allocation4], 4294967280 }
 0x2bf   :  { %384 = vsyncpa [#allocation4], 1 }

</bundles_post_ra>
